<compile_context>
chip_gen: v7x
topology: tpu7x:2x2x1
jax: 0.10.0
libtpu: 0.0.40
codegen_flags: <defaults>
</compile_context>

<pallas_src>
import numpy as np
import jax
import jax.numpy as jnp
from jax import lax
from jax.experimental import pallas as pl
from jax.experimental.pallas import tpu as pltpu


def _round_up(x: int, m: int) -> int:
    return (x + m - 1) // m * m


def features_linear_kernel(idx_ref, off_ref, emb_ref, bias_ref, out_ref, acc_ref):
    # idx_ref : (TB, F)    int32 VMEM   raw field indices for this batch tile
    # off_ref : (1, F)     int32 VMEM   per-field offsets (resident)
    # emb_ref : (1, TV)    f32   VMEM   lane-dense slice [k*TV, (k+1)*TV) of table
    # bias_ref: (1, 1)     f32   SMEM   scalar bias
    # out_ref : (1, 1, TB) f32   VMEM   lane-dense output row of this batch tile
    # acc_ref : (TB, 1)    f32   VMEM   per-row accumulator (lives across V tiles)
    k = pl.program_id(1)
    num_v = pl.num_programs(1)

    @pl.when(k == 0)
    def _init():
        acc_ref[...] = jnp.zeros_like(acc_ref)

    idx = idx_ref[...] + off_ref[...]            # (TB, F) offset-adjusted indices
    emb_row = emb_ref[...]                       # (1, TV) lane-dense table slice
    tb, num_fields = idx.shape
    tv = emb_row.shape[1]

    # Global vocab id held by each lane of this V tile.
    vocab = lax.broadcasted_iota(jnp.int32, (tb, tv), 1) + k * tv

    acc = acc_ref[...]                           # (TB, 1)
    for f in range(num_fields):                  # static & small -> unrolled
        hit = vocab == idx[:, f:f + 1]           # (TB, TV) compare (VPU)
        # select (VPU) + lane reduce (XLU): picks emb[idx] for rows whose index
        # falls inside this vocab tile, 0 otherwise.
        acc = acc + jnp.sum(jnp.where(hit, emb_row, 0.0),
                            axis=-1, keepdims=True)
    acc_ref[...] = acc

    @pl.when(k == num_v - 1)
    def _finalize():
        col = acc_ref[...] + bias_ref[0, 0]                      # (TB, 1)
        # Emit a lane-dense (1, TB) row instead of a width-1 column store.
        # The (TB,1)->(1,TB) relayout runs once per batch tile on the
        # otherwise-idle MXU: put the column on a diagonal and contract with
        # a ones matrix (all rows of the product equal the transposed column).
        rows = lax.broadcasted_iota(jnp.int32, (tb, tb), 0)
        cols = lax.broadcasted_iota(jnp.int32, (tb, tb), 1)
        diag = jnp.where(rows == cols, col, 0.0)                 # (TB, TB)
        row = jnp.dot(jnp.ones((8, tb), jnp.float32), diag,
                      preferred_element_type=jnp.float32)        # (8, TB)
        out_ref[0] = row[0:1, :]


def features_linear(x_idx, offsets, emb_weight, bias, *, block_b=128, block_v=512):
    """x_idx: (B, F) integer field indices. Returns (B, 1) float32 (as torch)."""
    B, F = x_idx.shape
    V = emb_weight.shape[0]

    TB = block_b
    B_pad = _round_up(max(B, 1), TB)
    nB = B_pad // TB

    v128 = _round_up(V, 128)
    TV = v128 if v128 <= block_v else block_v
    V_pad = _round_up(V, TV)
    nV = V_pad // TV

    # Pad batch rows with index 0 (valid; sliced off below). Lay the embedding
    # table out lane-dense as a zero-padded (1, V_pad) row.
    idx = jnp.zeros((B_pad, F), jnp.int32).at[:B].set(x_idx.astype(jnp.int32))
    off = jnp.asarray(offsets, jnp.int32).reshape(1, F)
    emb_row = jnp.zeros((1, V_pad), jnp.float32).at[0, :V].set(
        emb_weight.astype(jnp.float32).reshape(V))
    bias_2d = jnp.asarray(bias, jnp.float32).reshape(1, 1)

    cost = pl.CostEstimate(
        flops=2 * B_pad * V_pad * F,                  # compare + select stream
        transcendentals=0,
        bytes_accessed=idx.size * 4 + nB * V_pad * 4 + B_pad * 4 + 8,
    )

    out = pl.pallas_call(
        features_linear_kernel,
        out_shape=jax.ShapeDtypeStruct((nB, 1, TB), jnp.float32),
        grid_spec=pltpu.PrefetchScalarGridSpec(
            num_scalar_prefetch=0,
            grid=(nB, nV),                                        # reduction (V) last
            in_specs=[
                pl.BlockSpec((TB, F), lambda i, k: (i, 0)),       # batch-tiled indices
                pl.BlockSpec((1, F), lambda i, k: (0, 0)),        # offsets (resident)
                pl.BlockSpec((1, TV), lambda i, k: (0, k)),       # lane-dense emb tile
                pl.BlockSpec(memory_space=pltpu.MemorySpace.SMEM),  # bias scalar
            ],
            out_specs=pl.BlockSpec((1, 1, TB), lambda i, k: (i, 0, 0)),
            scratch_shapes=[pltpu.VMEM((TB, 1), jnp.float32)],    # per-row accumulator
        ),
        compiler_params=pltpu.CompilerParams(
            dimension_semantics=("parallel", "arbitrary"),        # batch // (v7x 2 TCs)
            vmem_limit_bytes=32 * 1024 * 1024,                    # fits v7x scoped VMEM
        ),
        cost_estimate=cost,
    )(idx, off, emb_row, bias_2d)

    return out.reshape(B_pad, 1)[:B]                              # (B, 1)


if __name__ == "__main__":
    key = jax.random.PRNGKey(0)
    k_emb, k_idx = jax.random.split(key)

    # Module config (synthetic, deterministic)
    field_dims = [3, 4, 5]                 # sum = 12 = embedding rows
    V = int(sum(field_dims))
    B, F = 2, len(field_dims)

    # offsets = (0, cumsum(field_dims)[:-1])
    offsets = jnp.asarray(
        np.array((0, *np.cumsum(field_dims)[:-1]), dtype=np.int32))

    # Xavier-uniform init for nn.Embedding(V, 1).weight  (fan_in=V, fan_out=1)
    bound = float(np.sqrt(6.0 / (V + 1)))
    emb_weight = jax.random.uniform(
        k_emb, (V, 1), jnp.float32, -bound, bound)
    bias = jnp.zeros((1,), jnp.float32)

    # Per-field indices in [0, field_dims[f])
    idx_cols = []
    keys = jax.random.split(k_idx, F)
    for f in range(F):
        idx_cols.append(
            jax.random.randint(keys[f], (B, 1), 0, field_dims[f], dtype=jnp.int32))
    x = jnp.concatenate(idx_cols, axis=1)   # (B, F) int32

    y = features_linear(x, offsets, emb_weight, bias)
    y = jax.block_until_ready(y)

    # Pure-JAX reference check (silent)
    x_off = x + offsets[None, :]
    y_ref = jnp.sum(emb_weight[x_off], axis=1) + bias   # (B, 1)
    assert y.shape == (B, 1)
    np.testing.assert_allclose(np.asarray(y), np.asarray(y_ref),
                               rtol=1e-6, atol=1e-6)

    print("KERNEL_OK")
</pallas_src>

<mosaic_0001>
module attributes {stable_mosaic.version = 11 : i64} {
  func.func @features_linear_kernel(%arg0: i32, %arg1: i32, %arg2: memref<128x3xi32, #tpu.memory_space<vmem>>, %arg3: memref<1x3xi32, #tpu.memory_space<vmem>>, %arg4: memref<1x128xf32, #tpu.memory_space<vmem>>, %arg5: memref<1x1xf32, #tpu.memory_space<smem>>, %arg6: memref<1x1x128xf32, #tpu.memory_space<vmem>>, %arg7: memref<128x1xf32, #tpu.memory_space<vmem>>) attributes {dimension_semantics = [#tpu.dimension_semantics<parallel>, #tpu.dimension_semantics<arbitrary>], iteration_bounds = array<i64: 1, 1>, scalar_prefetch = 0 : i64, scratch_operands = 1 : i64, tpu.core_type = #tpu.core_type<tc>, window_params = [{transform_indices = @transform_0, window_bounds = array<i64: 128, 3>}, {pipeline_mode = #tpu.pipeline_mode<synchronous>, transform_indices = @transform_1, window_bounds = array<i64: 1, 3>}, {transform_indices = @transform_2, window_bounds = array<i64: 1, 128>}, {transform_indices = @transform_3, window_bounds = array<i64: 1, 1>}, {transform_indices = @transform_4, window_bounds = array<i64: 1, 1, 128>}]} {
    %c0_i32 = arith.constant 0 : i32
    %0 = arith.cmpi eq, %arg1, %c0_i32 : i32
    %1 = arith.extui %0 : i1 to i32
    %c0_i32_0 = arith.constant 0 : i32
    %2 = arith.cmpi ne, %1, %c0_i32_0 : i32
    scf.if %2 {
      %cst_17 = arith.constant 0.000000e+00 : f32
      %47 = vector.broadcast %cst_17 : f32 to vector<128x1xf32>
      %c0_18 = arith.constant 0 : index
      %c0_19 = arith.constant 0 : index
      %48 = vector.load %arg7[%c0_18, %c0_19] : memref<128x1xf32, #tpu.memory_space<vmem>>, vector<128x1xf32>
      tpu.vector_store %arg7[%c0_18, %c0_19], %47 {strides = array<i32>} : memref<128x1xf32, #tpu.memory_space<vmem>>, vector<128x1xf32>,
    } else {
    }
    %c0 = arith.constant 0 : index
    %c0_1 = arith.constant 0 : index
    %3 = vector.load %arg2[%c0, %c0_1] : memref<128x3xi32, #tpu.memory_space<vmem>>, vector<128x3xi32>
    %c0_2 = arith.constant 0 : index
    %c0_3 = arith.constant 0 : index
    %4 = vector.load %arg3[%c0_2, %c0_3] : memref<1x3xi32, #tpu.memory_space<vmem>>, vector<1x3xi32>
    %5 = vector.broadcast %4 : vector<1x3xi32> to vector<128x3xi32>
    %6 = arith.addi %3, %5 : vector<128x3xi32>
    %c0_4 = arith.constant 0 : index
    %c0_5 = arith.constant 0 : index
    %7 = vector.load %arg4[%c0_4, %c0_5] : memref<1x128xf32, #tpu.memory_space<vmem>>, vector<1x128xf32>
    %8 = tpu.iota {dimensions = array<i32: 1>} : vector<128x128xi32>
    %c128_i32 = arith.constant 128 : i32
    %9 = arith.muli %arg1, %c128_i32 : i32
    %10 = vector.broadcast %9 : i32 to vector<128x128xi32>
    %11 = arith.addi %8, %10 : vector<128x128xi32>
    %c0_6 = arith.constant 0 : index
    %c0_7 = arith.constant 0 : index
    %12 = vector.load %arg7[%c0_6, %c0_7] : memref<128x1xf32, #tpu.memory_space<vmem>>, vector<128x1xf32>
    %13 = vector.extract_strided_slice %6 {offsets = [0, 0], sizes = [128, 1], strides = [1, 1]} : vector<128x3xi32> to vector<128x1xi32>
    %14 = vector.broadcast %13 : vector<128x1xi32> to vector<128x128xi32>
    %15 = arith.cmpi eq, %11, %14 : vector<128x128xi32>
    %cst = arith.constant 0.000000e+00 : f32
    %16 = vector.shape_cast %7 : vector<1x128xf32> to vector<1x128xf32>
    %17 = vector.broadcast %16 : vector<1x128xf32> to vector<128x128xf32>
    %18 = vector.broadcast %cst : f32 to vector<128x128xf32>
    %19 = arith.select %15, %17, %18 : vector<128x128xi1>, vector<128x128xf32>
    %cst_8 = arith.constant dense<0.000000e+00> : vector<128xf32>
    %20 = vector.multi_reduction <add>, %19, %cst_8 [1] : vector<128x128xf32> to vector<128xf32>
    %21 = vector.shape_cast %20 : vector<128xf32> to vector<128x1xf32>
    %22 = arith.addf %12, %21 : vector<128x1xf32>
    %23 = vector.extract_strided_slice %6 {offsets = [0, 1], sizes = [128, 1], strides = [1, 1]} : vector<128x3xi32> to vector<128x1xi32>
    %24 = vector.broadcast %23 : vector<128x1xi32> to vector<128x128xi32>
    %25 = arith.cmpi eq, %11, %24 : vector<128x128xi32>
    %cst_9 = arith.constant 0.000000e+00 : f32
    %26 = vector.shape_cast %7 : vector<1x128xf32> to vector<1x128xf32>
    %27 = vector.broadcast %26 : vector<1x128xf32> to vector<128x128xf32>
    %28 = vector.broadcast %cst_9 : f32 to vector<128x128xf32>
    %29 = arith.select %25, %27, %28 : vector<128x128xi1>, vector<128x128xf32>
    %cst_10 = arith.constant dense<0.000000e+00> : vector<128xf32>
    %30 = vector.multi_reduction <add>, %29, %cst_10 [1] : vector<128x128xf32> to vector<128xf32>
    %31 = vector.shape_cast %30 : vector<128xf32> to vector<128x1xf32>
    %32 = arith.addf %22, %31 : vector<128x1xf32>
    %33 = vector.extract_strided_slice %6 {offsets = [0, 2], sizes = [128, 1], strides = [1, 1]} : vector<128x3xi32> to vector<128x1xi32>
    %34 = vector.broadcast %33 : vector<128x1xi32> to vector<128x128xi32>
    %35 = arith.cmpi eq, %11, %34 : vector<128x128xi32>
    %cst_11 = arith.constant 0.000000e+00 : f32
    %36 = vector.shape_cast %7 : vector<1x128xf32> to vector<1x128xf32>
    %37 = vector.broadcast %36 : vector<1x128xf32> to vector<128x128xf32>
    %38 = vector.broadcast %cst_11 : f32 to vector<128x128xf32>
    %39 = arith.select %35, %37, %38 : vector<128x128xi1>, vector<128x128xf32>
    %cst_12 = arith.constant dense<0.000000e+00> : vector<128xf32>
    %40 = vector.multi_reduction <add>, %39, %cst_12 [1] : vector<128x128xf32> to vector<128xf32>
    %41 = vector.shape_cast %40 : vector<128xf32> to vector<128x1xf32>
    %42 = arith.addf %32, %41 : vector<128x1xf32>
    %c0_13 = arith.constant 0 : index
    %c0_14 = arith.constant 0 : index
    %43 = vector.load %arg7[%c0_13, %c0_14] : memref<128x1xf32, #tpu.memory_space<vmem>>, vector<128x1xf32>
    tpu.vector_store %arg7[%c0_13, %c0_14], %42 {strides = array<i32>} : memref<128x1xf32, #tpu.memory_space<vmem>>, vector<128x1xf32>,
    %c0_i32_15 = arith.constant 0 : i32
    %44 = arith.cmpi eq, %arg1, %c0_i32_15 : i32
    %45 = arith.extui %44 : i1 to i32
    %c0_i32_16 = arith.constant 0 : i32
    %46 = arith.cmpi ne, %45, %c0_i32_16 : i32
    scf.if %46 {
      %c0_17 = arith.constant 0 : index
      %c0_18 = arith.constant 0 : index
      %47 = vector.load %arg7[%c0_17, %c0_18] : memref<128x1xf32, #tpu.memory_space<vmem>>, vector<128x1xf32>
      %c0_19 = arith.constant 0 : index
      %c0_20 = arith.constant 0 : index
      %48 = memref.load %arg5[%c0_19, %c0_20] : memref<1x1xf32, #tpu.memory_space<smem>>
      %49 = vector.broadcast %48 : f32 to vector<128x1xf32>
      %50 = arith.addf %47, %49 : vector<128x1xf32>
      %51 = tpu.iota {dimensions = array<i32: 0>} : vector<128x128xi32>
      %52 = tpu.iota {dimensions = array<i32: 1>} : vector<128x128xi32>
      %53 = arith.cmpi eq, %51, %52 : vector<128x128xi32>
      %cst_21 = arith.constant 0.000000e+00 : f32
      %54 = vector.shape_cast %50 : vector<128x1xf32> to vector<128x1xf32>
      %55 = vector.broadcast %54 : vector<128x1xf32> to vector<128x128xf32>
      %56 = vector.broadcast %cst_21 : f32 to vector<128x128xf32>
      %57 = arith.select %53, %55, %56 : vector<128x128xi1>, vector<128x128xf32>
      %cst_22 = arith.constant 1.000000e+00 : f32
      %58 = vector.broadcast %cst_22 : f32 to vector<8x128xf32>
      %cst_23 = arith.constant dense<0.000000e+00> : vector<8x128xf32>
      %59 = tpu.matmul %58, %57, %cst_23 {dimension_numbers = #tpu.dot_dimension_numbers<[1], [0], [0], [1], [0, 0, 1, 1], [], []>} : vector<8x128xf32>, vector<128x128xf32>, vector<8x128xf32> -> vector<8x128xf32>
      %60 = vector.extract_strided_slice %59 {offsets = [0, 0], sizes = [1, 128], strides = [1, 1]} : vector<8x128xf32> to vector<1x128xf32>
      %c0_24 = arith.constant 0 : index
      %c0_25 = arith.constant 0 : index
      %c0_26 = arith.constant 0 : index
      %61 = vector.load %arg6[%c0_24, %c0_25, %c0_26] : memref<1x1x128xf32, #tpu.memory_space<vmem>>, vector<1x1x128xf32>
      %62 = vector.shape_cast %61 : vector<1x1x128xf32> to vector<1x128xf32>
      %63 = vector.shape_cast %60 : vector<1x128xf32> to vector<1x1x128xf32>
      tpu.vector_store %arg6[%c0_24, %c0_25, %c0_26], %63 {strides = array<i32>} : memref<1x1x128xf32, #tpu.memory_space<vmem>>, vector<1x1x128xf32>,
    } else {
    }
    return
  }
  func.func @transform_0(%arg0: i32, %arg1: i32) -> (i32, i32) {
    %c0_i32 = arith.constant 0 : i32
    %c0_i32_0 = arith.constant 0 : i32
    return %arg0, %c0_i32 : i32, i32
  }
  func.func @transform_1(%arg0: i32, %arg1: i32) -> (i32, i32) {
    %c0_i32 = arith.constant 0 : i32
    %c0_i32_0 = arith.constant 0 : i32
    %c0_i32_1 = arith.constant 0 : i32
    return %c0_i32, %c0_i32_0 : i32, i32
  }
  func.func @transform_2(%arg0: i32, %arg1: i32) -> (i32, i32) {
    %c0_i32 = arith.constant 0 : i32
    %c0_i32_0 = arith.constant 0 : i32
    return %c0_i32, %arg1 : i32, i32
  }
  func.func @transform_3(%arg0: i32, %arg1: i32) -> (i32, i32) {
    %c0_i32 = arith.constant 0 : i32
    %c0_i32_0 = arith.constant 0 : i32
    %c0_i32_1 = arith.constant 0 : i32
    return %c0_i32, %c0_i32_0 : i32, i32
  }
  func.func @transform_4(%arg0: i32, %arg1: i32) -> (i32, i32, i32) {
    %c0_i32 = arith.constant 0 : i32
    %c0_i32_0 = arith.constant 0 : i32
    %c0_i32_1 = arith.constant 0 : i32
    return %arg0, %c0_i32, %c0_i32_0 : i32, i32, i32
  }
}

</mosaic_0001>

<bundles_post_ra>
// kernel: tpu_custom_call.1
= control target key start
LH: loop header
LB: loop body
LE: loop exit
PB: predicated region body
PF: predicated region fallthrough
CT: control target
= control target key end

     0   :  { %v958_v3 = vmov 2   ;;  %v959_v5 = vmov 1   ;;  %s1423_s0 = inlined_call_operand.vmem [shape: s32[128,3], index: 0, kind: input, shape index: {}]   ;;  %s1424_s1 = inlined_call_operand.vmem [shape: s32[1,3], index: 1, kind: input, shape index: {}]   ;;  %s1425_s2 = inlined_call_operand.vmem [shape: f32[1,128], index: 2, kind: input, shape index: {}]   ;;  %s1426_s3 = inlined_call_operand.<no memory space> [shape: f32[1,1], index: 3, kind: input, shape index: {}]   ;;  %s1427_s4 = inlined_call_operand.hbm [shape: f32[1,1,128], index: 4, kind: output, shape index: {}]  }
   0x1   :  { %v40_v0 = vld [vmem:[%s1423_s0] sm:$0xff]  ;;  %v42_v2 = vld [vmem:[%s1423_s0 + $0x10] sm:$0xff]  ;;  %869 = vset.pattern.permute.xlu0 %v958_v3  ;;  %867 = vset.pattern.permute.xlu1 %v959_v5  ;;  %v41_v6 = vld [vmem:[%s1423_s0 + $0x8] sm:$0xff] }
   0x2   :  { %v997_v1 = vld [vmem:[%s1424_s1] ss:$0 sm:$0xff]  ;;  %v43_v10 = vld [vmem:[%s1423_s0 + $0x18] sm:$0xff] }
   0x3   :  { %v1004_v4 = vadd.s32 %v997_v1, %v40_v0  ;;  %v1012_v7 = vadd.s32 %v997_v1, %v42_v2  ;;  %v1016_v8 = vadd.s32 %v997_v1, %v41_v6  ;;  %v44_v9 = vld [vmem:[%s1423_s0 + $0x20] sm:$0xff] }
   0x5   :  { %362 = vperm.xlu0 %869, %v1004_v4   ;;  %234 = vperm.xlu1 %867, %v1004_v4  }
   0x6   :  { %10 = vsyncpa [#allocation5], 0  ;;  %v65_v11 = vadd.s32 %v997_v1, %v44_v9  ;;  %v46_v12 = vld [vmem:[%s1423_s0 + $0x30] sm:$0xff]  ;;  %v64_v13 = vadd.s32 %v997_v1, %v43_v10  ;;  %v960_v15 = vmov 0   ;;  %v48_v16 = vld [vmem:[%s1423_s0 + $0x40] sm:$0xff]  ;;  %v78_v61 = vlaneseq }
   0x7   :  { %v67_v14 = vadd.s32 %v997_v1, %v46_v12  ;;  %v69_v17 = vadd.s32 %v997_v1, %v48_v16  ;;  %v50_v18 = vld [vmem:[%s1423_s0 + $0x50] sm:$0xff]  ;;  %v52_v20 = vld [vmem:[%s1423_s0 + $0x60] sm:$0xff]  ;;  %v45_v22 = vld [vmem:[%s1423_s0 + $0x28] sm:$0xff]  ;;  %vm23_vm4 = vcmask 7168   ;;  %v961_v10 = vmov 0.0  }
   0x8   :  { %v71_v19 = vadd.s32 %v997_v1, %v50_v18  ;;  %v73_v21 = vadd.s32 %v997_v1, %v52_v20  ;;  %v66_v23 = vadd.s32 %v997_v1, %v45_v22  ;;  %v47_v24 = vld [vmem:[%s1423_s0 + $0x38] sm:$0xff]  ;;  %v49_v26 = vld [vmem:[%s1423_s0 + $0x48] sm:$0xff]  ;;  %v54_v34 = vld [vmem:[%s1423_s0 + $0x70] sm:$0xff]  ;;  %v1153_v63 = vand.u32 127, %v78_v61  ;;  %24 = vst.msk [vmem:[#allocation2] sm:$0xff] %vm23_vm4, %v961_v10 }
   0x9   :  { %368 = vperm.xlu0 %869, %v1012_v7   ;;  %237 = vperm.xlu1 %867, %v1016_v8   ;;  %v68_v25 = vadd.s32 %v997_v1, %v47_v24  ;;  %v70_v27 = vadd.s32 %v997_v1, %v49_v26  ;;  %v51_v28 = vld [vmem:[%s1423_s0 + $0x58] sm:$0xff]  ;;  %v53_v30 = vld [vmem:[%s1423_s0 + $0x68] sm:$0xff]  ;;  %v75_v35 = vadd.s32 %v997_v1, %v54_v34  ;;  %v1160_v2 = vld [vmem:[%s1425_s2] ss:$0 sm:$0xff] }
   0xa   :  { %v72_v29 = vadd.s32 %v997_v1, %v51_v28  ;;  %v74_v31 = vadd.s32 %v997_v1, %v53_v30  ;;  %v55_v32 = vld [vmem:[%s1423_s0 + $0x78] sm:$0xff]  ;;  %25 = vst.msk [vmem:[#allocation2 + $0x8] sm:$0xff] %vm23_vm4, %v961_v10  ;;  %26 = vst.msk [vmem:[#allocation2 + $0x10] sm:$0xff] %vm23_vm4, %v961_v10 }
   0xb   :  { %v76_v33 = vadd.s32 %v997_v1, %v55_v32  ;;  %27 = vst.msk [vmem:[#allocation2 + $0x18] sm:$0xff] %vm23_vm4, %v961_v10  ;;  %28 = vst.msk [vmem:[#allocation2 + $0x20] sm:$0xff] %vm23_vm4, %v961_v10 }
   0xc   :  { %29 = vst.msk [vmem:[#allocation2 + $0x28] sm:$0xff] %vm23_vm4, %v961_v10  ;;  %30 = vst.msk [vmem:[#allocation2 + $0x30] sm:$0xff] %vm23_vm4, %v961_v10 }
   0xd   :  { %374 = vperm.xlu0 %869, %v65_v11   ;;  %868 = vset.pattern.permute.xlu1 %v960_v15  ;;  %31 = vst.msk [vmem:[#allocation2 + $0x38] sm:$0xff] %vm23_vm4, %v961_v10  ;;  %32 = vst.msk [vmem:[#allocation2 + $0x40] sm:$0xff] %vm23_vm4, %v961_v10 }
   0xe   :  { %109 = vperm.xlu1 %868, %v64_v13   ;;  %33 = vst.msk [vmem:[#allocation2 + $0x48] sm:$0xff] %vm23_vm4, %v961_v10  ;;  %34 = vst.msk [vmem:[#allocation2 + $0x50] sm:$0xff] %vm23_vm4, %v961_v10 }
   0xf   :  { %35 = vst.msk [vmem:[#allocation2 + $0x58] sm:$0xff] %vm23_vm4, %v961_v10  ;;  %36 = vst.msk [vmem:[#allocation2 + $0x60] sm:$0xff] %vm23_vm4, %v961_v10 }
  0x10   :  { %37 = vst.msk [vmem:[#allocation2 + $0x68] sm:$0xff] %vm23_vm4, %v961_v10  ;;  %38 = vst.msk [vmem:[#allocation2 + $0x70] sm:$0xff] %vm23_vm4, %v961_v10 }
  0x11   :  { %380 = vperm.xlu0 %869, %v67_v14   ;;  %39 = vst.msk [vmem:[#allocation2 + $0x78] sm:$0xff] %vm23_vm4, %v961_v10 }
  0x12   :  { %870 = vset.pattern.permute.xlu1 %v958_v3 }
  0x13   :  { %365 = vperm.xlu1 %870, %v1016_v8  }
  0x15   :  { %386 = vperm.xlu0 %869, %v69_v17  }
  0x17   :  { %871 = vset.pattern.permute.xlu1 %v959_v5 }
  0x18   :  { %240 = vperm.xlu1 %871, %v1012_v7  }
  0x19   :  { %392 = vperm.xlu0 %869, %v71_v19  }
  0x1c   :  { %872 = vset.pattern.permute.xlu1 %v960_v15 }
  0x1d   :  { %398 = vperm.xlu0 %869, %v73_v21   ;;  %112 = vperm.xlu1 %872, %v65_v11  }
  0x21   :  { %888 = vset.pattern.permute.xlu0 %v959_v5  ;;  %115 = vperm.xlu1 %872, %v66_v23  }
  0x22   :  { %243 = vperm.xlu0 %888, %v64_v13  }
  0x25   :  { %873 = vset.pattern.permute.xlu1 %v958_v3 }
  0x26   :  { %249 = vperm.xlu0 %888, %v66_v23   ;;  %371 = vperm.xlu1 %873, %v64_v13  }
  0x2a   :  { %255 = vperm.xlu0 %888, %v68_v25   ;;  %874 = vset.pattern.permute.xlu1 %v959_v5 }
  0x2b   :  { %246 = vperm.xlu1 %874, %v65_v11  }
  0x2e   :  { %261 = vperm.xlu0 %888, %v70_v27  }
  0x2f   :  { %875 = vset.pattern.permute.xlu1 %v960_v15 }
  0x30   :  { %118 = vperm.xlu1 %875, %v67_v14  }
  0x32   :  { %267 = vperm.xlu0 %888, %v72_v29  }
  0x34   :  { %121 = vperm.xlu1 %875, %v68_v25  }
  0x36   :  { %273 = vperm.xlu0 %888, %v74_v31  }
  0x38   :  { %876 = vset.pattern.permute.xlu1 %v958_v3 }
  0x39   :  { %377 = vperm.xlu1 %876, %v66_v23  }
  0x3a   :  { %279 = vperm.xlu0 %888, %v76_v33  }
  0x3d   :  { %877 = vset.pattern.permute.xlu1 %v959_v5 }
  0x3e   :  { %891 = vset.pattern.permute.xlu0 %v960_v15  ;;  %252 = vperm.xlu1 %877, %v67_v14  }
  0x3f   :  { %100 = vperm.xlu0 %891, %v1004_v4  }
  0x42   :  { %878 = vset.pattern.permute.xlu1 %v960_v15 }
  0x43   :  { %103 = vperm.xlu0 %891, %v1016_v8   ;;  %124 = vperm.xlu1 %878, %v69_v17  }
  0x47   :  { %106 = vperm.xlu0 %891, %v1012_v7   ;;  %127 = vperm.xlu1 %878, %v70_v27  }
  0x4b   :  { %879 = vset.pattern.permute.xlu1 %v958_v3 }
  0x4c   :  { %383 = vperm.xlu1 %879, %v68_v25  }
  0x50   :  { %880 = vset.pattern.permute.xlu1 %v959_v5 }
  0x51   :  { %258 = vperm.xlu1 %880, %v69_v17  }
  0x55   :  { %881 = vset.pattern.permute.xlu1 %v960_v15 }
  0x56   :  { %130 = vperm.xlu1 %881, %v71_v19  }
  0x5a   :  { %133 = vperm.xlu1 %881, %v72_v29  }
  0x5e   :  { %882 = vset.pattern.permute.xlu1 %v958_v3 }
  0x5f   :  { %389 = vperm.xlu1 %882, %v70_v27  }
  0x63   :  { %883 = vset.pattern.permute.xlu1 %v959_v5 }
  0x64   :  { %264 = vperm.xlu1 %883, %v71_v19  }
  0x68   :  { %884 = vset.pattern.permute.xlu1 %v960_v15 }
  0x69   :  { %136 = vperm.xlu1 %884, %v73_v21  }
  0x6d   :  { %139 = vperm.xlu1 %884, %v74_v31  }
  0x71   :  { %885 = vset.pattern.permute.xlu1 %v958_v3 }
  0x72   :  { %395 = vperm.xlu1 %885, %v72_v29  }
  0x76   :  { %886 = vset.pattern.permute.xlu1 %v959_v5 }
  0x77   :  { %270 = vperm.xlu1 %886, %v73_v21  }
  0x7b   :  { %887 = vset.pattern.permute.xlu1 %v960_v15 }
  0x7c   :  { %142 = vperm.xlu1 %887, %v75_v35  }
  0x80   :  { %145 = vperm.xlu1 %887, %v76_v33  }
  0x84   :  { %v1098_v36 = vpop.permute.xlu0 %362  ;;  %889 = vset.pattern.permute.xlu1 %v958_v3  ;;  %v235_v37 = vpop.permute.xlu1 %234 }
  0x85   :  { %401 = vperm.xlu1 %889, %v74_v31   ;;  %vm281_vm1 = vcmp.eq.s32.totalorder %v1153_v63, %v235_v37  ;;  %vm409_vm6 = vcmp.eq.s32.totalorder %v1153_v63, %v1098_v36 }
  0x86   :  { %v297_v7 = vsel %vm281_vm1, %v1160_v2, 0.0  ;;  %v425_v14 = vsel %vm409_vm6, %v1160_v2, 0.0 }
  0x88   :  { %v1101_v38 = vpop.permute.xlu0 %368  ;;  %v1103_v39 = vpop.permute.xlu1 %237 }
  0x89   :  { %890 = vset.pattern.permute.xlu1 %v959_v5  ;;  %vm282_vm3 = vcmp.eq.s32.totalorder %v1153_v63, %v1103_v39  ;;  %vm411_vm12 = vcmp.eq.s32.totalorder %v1153_v63, %v1101_v38 }
  0x8a   :  { %276 = vperm.xlu1 %890, %v75_v35   ;;  %v298_v12 = vsel %vm282_vm3, %v1160_v2, 0.0  ;;  %v427_v22 = vsel %vm411_vm12, %v1160_v2, 0.0 }
  0x8c   :  { %v1106_v40 = vpop.permute.xlu0 %374 }
  0x8d   :  { %v1108_v41 = vpop.permute.xlu1 %109 }
  0x8e   :  { %892 = vset.pattern.permute.xlu1 %v958_v3  ;;  %vm150_vm7 = vcmp.eq.s32.totalorder %v1153_v63, %v1108_v41 }
  0x8f   :  { %404 = vperm.xlu1 %892, %v75_v35  }
  0x90   :  { %v1111_v42 = vpop.permute.xlu0 %380 }
  0x92   :  { %v1113_v43 = vpop.permute.xlu1 %365 }
  0x93   :  { %407 = vperm.xlu1 %892, %v76_v33   ;;  %vm410_vm8 = vcmp.eq.s32.totalorder %v1153_v63, %v1113_v43 }
  0x94   :  { %v1115_v44 = vpop.permute.xlu0 %386  ;;  %v426_v16 = vsel %vm410_vm8, %v1160_v2, 0.0 }
  0x97   :  { %v1117_v45 = vpop.permute.xlu1 %240  ;;  %893 = vset.pattern.permute.xlu1 %v960_v15  ;;  %v172_v15 = vsel %vm150_vm7, %v1160_v2, 0.0 }
  0x98   :  { %v1120_v46 = vpop.permute.xlu0 %392  ;;  %vm283_vm9 = vcmp.eq.s32.totalorder %v1153_v63, %v1117_v45 }
  0x99   :  { %v299_v17 = vsel %vm283_vm9, %v1160_v2, 0.0  ;;  %vm415_vm9 = vcmp.eq.s32.totalorder %v1153_v63, %v1111_v42 }
  0x9a   :  { %v431_v39 = vsel %vm415_vm9, %v1160_v2, 0.0 }
  0x9c   :  { %v1122_v47 = vpop.permute.xlu0 %398  ;;  %v1124_v48 = vpop.permute.xlu1 %112 }
  0x9d   :  { %vm151_vm11 = vcmp.eq.s32.totalorder %v1153_v63, %v1124_v48 }
  0x9e   :  { %v173_v20 = vsel %vm151_vm11, %v1160_v2, 0.0 }
  0xa0   :  { %v1128_v50 = vpop.permute.xlu1 %115 }
  0xa1   :  { %v1126_v49 = vpop.permute.xlu0 %243  ;;  %vm152_vm13 = vcmp.eq.s32.totalorder %v1153_v63, %v1128_v50 }
  0xa2   :  { %vm284_vm10 = vcmp.eq.s32.totalorder %v1153_v63, %v1126_v49  ;;  %v174_v23 = vsel %vm152_vm13, %v1160_v2, 0.0 }
  0xa3   :  { %v300_v19 = vsel %vm284_vm10, %v1160_v2, 0.0 }
  0xa5   :  { %v1130_v51 = vpop.permute.xlu0 %249  ;;  %v1132_v52 = vpop.permute.xlu1 %371 }
  0xa6   :  { %vm412_vm14 = vcmp.eq.s32.totalorder %v1153_v63, %v1132_v52 }
  0xa7   :  { %v428_v25 = vsel %vm412_vm14, %v1160_v2, 0.0 }
  0xa9   :  { %v1134_v53 = vpop.permute.xlu0 %255 }
  0xaa   :  { %v1136_v54 = vpop.permute.xlu1 %246  ;;  %vm288_vm7 = vcmp.eq.s32.totalorder %v1153_v63, %v1134_v53 }
  0xab   :  { %vm285_vm15 = vcmp.eq.s32.totalorder %v1153_v63, %v1136_v54  ;;  %v304_v36 = vsel %vm288_vm7, %v1160_v2, 0.0 }
  0xac   :  { %v301_v26 = vsel %vm285_vm15, %v1160_v2, 0.0  ;;  %vm417_vm15 = vcmp.eq.s32.totalorder %v1153_v63, %v1115_v44 }
  0xad   :  { %v1138_v55 = vpop.permute.xlu0 %261  ;;  %v433_v50 = vsel %vm417_vm15, %v1160_v2, 0.0 }
  0xae   :  { %vm290_vm13 = vcmp.eq.s32.totalorder %v1153_v63, %v1138_v55 }
  0xaf   :  { %v1140_v56 = vpop.permute.xlu1 %118  ;;  %v306_v45 = vsel %vm290_vm13, %v1160_v2, 0.0 }
  0xb0   :  { %vm153_vm1 = vcmp.eq.s32.totalorder %v1153_v63, %v1140_v56 }
  0xb1   :  { %v1142_v57 = vpop.permute.xlu0 %267  ;;  %v175_v29 = vsel %vm153_vm1, %v1160_v2, 0.0 }
  0xb3   :  { %v1144_v58 = vpop.permute.xlu1 %121 }
  0xb4   :  { %vm154_vm3 = vcmp.eq.s32.totalorder %v1153_v63, %v1144_v58 }
  0xb5   :  { %v1146_v59 = vpop.permute.xlu0 %273  ;;  %v176_v32 = vsel %vm154_vm3, %v1160_v2, 0.0  ;;  %vm292_vm3 = vcmp.eq.s32.totalorder %v1153_v63, %v1142_v57 }
  0xb6   :  { %v308_v44 = vsel %vm292_vm3, %v1160_v2, 0.0  ;;  %vm963_vm3 = vmmov 0  }
  0xb7   :  { %824 = vmatprep.mubr.msk.f32.mxu0 %vm963_vm3, %v961_v10 }
  0xb8   :  { %v1148_v60 = vpop.permute.xlu1 %377 }
  0xb9   :  { %v1150_v62 = vpop.permute.xlu0 %279  ;;  %vm414_vm6 = vcmp.eq.s32.totalorder %v1153_v63, %v1148_v60 }
  0xba   :  { %v430_v33 = vsel %vm414_vm6, %v1160_v2, 0.0  ;;  %vm419_vm6 = vcmp.eq.s32.totalorder %v1153_v63, %v1120_v46 }
  0xbb   :  { %v435_v58 = vsel %vm419_vm6, %v1160_v2, 0.0 }
  0xbd   :  { %v1155_v0 = vpop.permute.xlu1 %252 }
  0xbe   :  { %v101_v1 = vpop.permute.xlu0 %100 }
  0xbf   :  { %vm147_vm0 = vcmp.eq.s32.totalorder %v1153_v63, %v101_v1 }
  0xc0   :  { %v169_v3 = vsel %vm147_vm0, %v1160_v2, 0.0  ;;  %vm286_vm0 = vcmp.eq.s32.totalorder %v1153_v63, %v1130_v51 }
  0xc1   :  { %185 = vadd.xlane.f32.xlu0 %v169_v3  ;;  %v302_v28 = vsel %vm286_vm0, %v1160_v2, 0.0 }
  0xc2   :  { %v104_v4 = vpop.permute.xlu0 %103  ;;  %v1165_v5 = vpop.permute.xlu1 %124 }
  0xc3   :  { %vm148_vm2 = vcmp.eq.s32.totalorder %v1153_v63, %v104_v4  ;;  %vm155_vm8 = vcmp.eq.s32.totalorder %v1153_v63, %v1165_v5 }
  0xc4   :  { %v170_v6 = vsel %vm148_vm2, %v1160_v2, 0.0  ;;  %vm413_vm2 = vcmp.eq.s32.totalorder %v1153_v63, %v1106_v40  ;;  %v177_v37 = vsel %vm155_vm8, %v1160_v2, 0.0 }
  0xc5   :  { %187 = vadd.xlane.f32.xlu1 %v170_v6  ;;  %313 = vadd.xlane.f32.xlu0 %v297_v7  ;;  %v429_v31 = vsel %vm413_vm2, %v1160_v2, 0.0 }
  0xc6   :  { %v107_v8 = vpop.permute.xlu0 %106  ;;  %v1173_v9 = vpop.permute.xlu1 %127 }
  0xc7   :  { %vm149_vm5 = vcmp.eq.s32.totalorder %v1153_v63, %v107_v8  ;;  %vm156_vm10 = vcmp.eq.s32.totalorder %v1153_v63, %v1173_v9 }
  0xc8   :  { %v171_v11 = vsel %vm149_vm5, %v1160_v2, 0.0  ;;  %vm287_vm5 = vcmp.eq.s32.totalorder %v1153_v63, %v1155_v0  ;;  %v178_v40 = vsel %vm156_vm10, %v1160_v2, 0.0  ;;  %vm294_vm10 = vcmp.eq.s32.totalorder %v1153_v63, %v1146_v59 }
  0xc9   :  { %189 = vadd.xlane.f32.xlu1 %v171_v11  ;;  %315 = vadd.xlane.f32.xlu0 %v298_v12  ;;  %v303_v34 = vsel %vm287_vm5, %v1160_v2, 0.0  ;;  %v310_v4 = vsel %vm294_vm10, %v1160_v2, 0.0 }
  0xcb   :  { %v1218_v13 = vpop.permute.xlu1 %383 }
  0xcc   :  { %vm416_vm11 = vcmp.eq.s32.totalorder %v1153_v63, %v1218_v13 }
  0xcd   :  { %441 = vadd.xlane.f32.xlu1 %v425_v14  ;;  %191 = vadd.xlane.f32.xlu0 %v172_v15  ;;  %v432_v42 = vsel %vm416_vm11, %v1160_v2, 0.0 }
  0xd0   :  { %v259_v18 = vpop.permute.xlu1 %258 }
  0xd1   :  { %443 = vadd.xlane.f32.xlu0 %v426_v16  ;;  %317 = vadd.xlane.f32.xlu1 %v299_v17  ;;  %vm289_vm12 = vcmp.eq.s32.totalorder %v1153_v63, %v259_v18  ;;  %v83_v16 = vld [vmem:[#allocation2] sm:$0xff] }
  0xd2   :  { %v305_v43 = vsel %vm289_vm12, %v1160_v2, 0.0  ;;  %vm421_vm12 = vcmp.eq.s32.totalorder %v1153_v63, %v1122_v47 }
  0xd3   :  { %v437_v59 = vsel %vm421_vm12, %v1160_v2, 0.0 }
  0xd5   :  { %319 = vadd.xlane.f32.xlu0 %v300_v19  ;;  %193 = vadd.xlane.f32.xlu1 %v173_v20  ;;  %v131_v21 = vpop.permute.xlu1 %130  ;;  %v84_v19 = vld [vmem:[#allocation2 + $0x8] sm:$0xff] }
  0xd6   :  { %vm157_vm14 = vcmp.eq.s32.totalorder %v1153_v63, %v131_v21 }
  0xd7   :  { %v179_v48 = vsel %vm157_vm14, %v1160_v2, 0.0 }
  0xd9   :  { %445 = vadd.xlane.f32.xlu1 %v427_v22  ;;  %195 = vadd.xlane.f32.xlu0 %v174_v23  ;;  %v134_v24 = vpop.permute.xlu1 %133 }
  0xda   :  { %vm158_vm0 = vcmp.eq.s32.totalorder %v1153_v63, %v134_v24 }
  0xdb   :  { %v180_v51 = vsel %vm158_vm0, %v1160_v2, 0.0 }
  0xdd   :  { %447 = vadd.xlane.f32.xlu0 %v428_v25  ;;  %321 = vadd.xlane.f32.xlu1 %v301_v26 }
  0xde   :  { %v390_v27 = vpop.permute.xlu1 %389 }
  0xdf   :  { %vm418_vm1 = vcmp.eq.s32.totalorder %v1153_v63, %v390_v27 }
  0xe0   :  { %v434_v53 = vsel %vm418_vm1, %v1160_v2, 0.0  ;;  %vm296_vm1 = vcmp.eq.s32.totalorder %v1153_v63, %v1150_v62 }
  0xe1   :  { %323 = vadd.xlane.f32.xlu0 %v302_v28  ;;  %197 = vadd.xlane.f32.xlu1 %v175_v29  ;;  %v312_v11 = vsel %vm296_vm1, %v1160_v2, 0.0  ;;  %v85_v28 = vld [vmem:[#allocation2 + $0x10] sm:$0xff] }
  0xe3   :  { %v265_v30 = vpop.permute.xlu1 %264 }
  0xe4   :  { %vm291_vm2 = vcmp.eq.s32.totalorder %v1153_v63, %v265_v30 }
  0xe5   :  { %449 = vadd.xlane.f32.xlu1 %v429_v31  ;;  %199 = vadd.xlane.f32.xlu0 %v176_v32  ;;  %v307_v54 = vsel %vm291_vm2, %v1160_v2, 0.0  ;;  %v86_v32 = vld [vmem:[#allocation2 + $0x18] sm:$0xff] }
  0xe8   :  { %v137_v35 = vpop.permute.xlu1 %136 }
  0xe9   :  { %451 = vadd.xlane.f32.xlu0 %v430_v33  ;;  %325 = vadd.xlane.f32.xlu1 %v303_v34  ;;  %vm159_vm5 = vcmp.eq.s32.totalorder %v1153_v63, %v137_v35 }
  0xea   :  { %v181_v55 = vsel %vm159_vm5, %v1160_v2, 0.0 }
  0xec   :  { %v140_v38 = vpop.permute.xlu1 %139 }
  0xed   :  { %327 = vadd.xlane.f32.xlu0 %v304_v36  ;;  %201 = vadd.xlane.f32.xlu1 %v177_v37  ;;  %vm160_vm7 = vcmp.eq.s32.totalorder %v1153_v63, %v140_v38  ;;  %v1335_v37 = vstv %s1426_s3  ;;  %s965_s3 = smov [#allocation4]  }
  0xee   :  { %v182_v57 = vsel %vm160_vm7, %v1160_v2, 0.0  ;;  %s749_s23 = sshll.u32 %s965_s3, 4  ;;  %s750_s23 = int_to_ptr.vmem [resolvable:$true] %s749_s23 }
  0xef   :  { %s934_s24 = scalar_lea.vmem %s750_s23, 16  ;;  %s938_s25 = scalar_lea.vmem %s750_s23, 32 }
  0xf0   :  { %p935_p0 = scmp.ne.s32.totalorder %s750_s23, %s934_s24  ;;  %p939_p1 = scmp.lt.s32.totalorder %s750_s23, %s750_s23 }
  0xf1   :  { %453 = vadd.xlane.f32.xlu1 %v431_v39  ;;  %203 = vadd.xlane.f32.xlu0 %v178_v40  ;;  %v396_v41 = vpop.permute.xlu1 %395  ;;  %p940_p2 = scmp.lt.s32.totalorder %s938_s25, %s934_s24 }
  0xf2   :  { %vm420_vm8 = vcmp.eq.s32.totalorder %v1153_v63, %v396_v41 }
  0xf3   :  { %v436_v1 = vsel %vm420_vm8, %v1160_v2, 0.0  ;;  %p941_p3 = por %p940_p2, %p939_p1 }
  0xf5   :  { %455 = vadd.xlane.f32.xlu0 %v432_v42  ;;  %329 = vadd.xlane.f32.xlu1 %v305_v43  ;;  %p942_p4 = pnand %p941_p3, %p935_p0 }
  0xf6   :  { %v271_v49 = vpop.permute.xlu1 %270 }
  0xf7   :  { %vm293_vm9 = vcmp.eq.s32.totalorder %v1153_v63, %v271_v49 }
  0xf8   :  { %v309_v0 = vsel %vm293_vm9, %v1160_v2, 0.0 }
  0xf9   :  { %331 = vadd.xlane.f32.xlu0 %v306_v45  ;;  %205 = vadd.xlane.f32.xlu1 %v179_v48 }
  0xfb   :  { %v143_v52 = vpop.permute.xlu1 %142 }
  0xfc   :  { %vm161_vm11 = vcmp.eq.s32.totalorder %v1153_v63, %v143_v52 }
  0xfd   :  { %457 = vadd.xlane.f32.xlu1 %v433_v50  ;;  %207 = vadd.xlane.f32.xlu0 %v180_v51  ;;  %v183_v3 = vsel %vm161_vm11, %v1160_v2, 0.0  ;;  %v87_v51 = vld [vmem:[#allocation2 + $0x20] sm:$0xff] }
  0xff   :  { %v146_v56 = vpop.permute.xlu1 %145 }
 0x100   :  { %vm162_vm13 = vcmp.eq.s32.totalorder %v1153_v63, %v146_v56 }
 0x101   :  { %459 = vadd.xlane.f32.xlu0 %v434_v53  ;;  %333 = vadd.xlane.f32.xlu1 %v307_v54  ;;  %v184_v5 = vsel %vm162_vm13, %v1160_v2, 0.0 }
 0x104   :  { %v402_v60 = vpop.permute.xlu1 %401 }
 0x105   :  { %335 = vadd.xlane.f32.xlu0 %v308_v44  ;;  %209 = vadd.xlane.f32.xlu1 %v181_v55  ;;  %vm422_vm15 = vcmp.eq.s32.totalorder %v1153_v63, %v402_v60  ;;  %v88_v44 = vld [vmem:[#allocation2 + $0x28] sm:$0xff]  ;;  %v962_v55 = vmov 0.0|0.0  }
 0x106   :  { %v438_v47 = vsel %vm422_vm15, %v1160_v2, 0.0  ;;  %827 = vmatprep.subr.bf16.mxu0 %v962_v55 }
 0x109   :  { %461 = vadd.xlane.f32.xlu1 %v435_v58  ;;  %211 = vadd.xlane.f32.xlu0 %v182_v57  ;;  %v277_v46 = vpop.permute.xlu1 %276 }
 0x10a   :  { %vm295_vm14 = vcmp.eq.s32.totalorder %v1153_v63, %v277_v46 }
 0x10b   :  { %v311_v7 = vsel %vm295_vm14, %v1160_v2, 0.0 }
 0x10d   :  { %463 = vadd.xlane.f32.xlu0 %v436_v1  ;;  %337 = vadd.xlane.f32.xlu1 %v309_v0 }
 0x10e   :  { %v405_v6 = vpop.permute.xlu1 %404 }
 0x10f   :  { %vm423_vm0 = vcmp.eq.s32.totalorder %v1153_v63, %v405_v6 }
 0x110   :  { %v439_v8 = vsel %vm423_vm0, %v1160_v2, 0.0 }
 0x111   :  { %339 = vadd.xlane.f32.xlu0 %v310_v4  ;;  %213 = vadd.xlane.f32.xlu1 %v183_v3 }
 0x112   :  { %v408_v9 = vpop.permute.xlu1 %407 }
 0x113   :  { %vm424_vm2 = vcmp.eq.s32.totalorder %v1153_v63, %v408_v9 }
 0x114   :  { %v440_v12 = vsel %vm424_vm2, %v1160_v2, 0.0 }
 0x115   :  { %465 = vadd.xlane.f32.xlu1 %v437_v59  ;;  %215 = vadd.xlane.f32.xlu0 %v184_v5 }
 0x119   :  { %467 = vadd.xlane.f32.xlu0 %v438_v47  ;;  %341 = vadd.xlane.f32.xlu1 %v311_v7 }
 0x11d   :  { %343 = vadd.xlane.f32.xlu0 %v312_v11  ;;  %469 = vadd.xlane.f32.xlu1 %v439_v8  ;;  %v89_v8 = vld [vmem:[#allocation2 + $0x30] sm:$0xff] }
 0x121   :  { %471 = vadd.xlane.f32.xlu0 %v440_v12 }
 0x14e   :  { %v186_v13 = vpop.xlane.xlu0 %185 }
 0x14f   :  { %v217_v18 = vadd.f32 %v186_v13, %v83_v16  ;;  %v90_v13 = vld [vmem:[#allocation2 + $0x38] sm:$0xff] }
 0x152   :  { %v314_v14 = vpop.xlane.xlu0 %313  ;;  %v188_v15 = vpop.xlane.xlu1 %187 }
 0x153   :  { %v345_v20 = vadd.f32 %v314_v14, %v217_v18  ;;  %v218_v23 = vadd.f32 %v188_v15, %v84_v19 }
 0x156   :  { %v316_v17 = vpop.xlane.xlu0 %315  ;;  %v190_v62 = vpop.xlane.xlu1 %189 }
 0x157   :  { %v346_v25 = vadd.f32 %v316_v17, %v218_v23  ;;  %v219_v31 = vadd.f32 %v190_v62, %v85_v28 }
 0x15a   :  { %v192_v21 = vpop.xlane.xlu0 %191  ;;  %v442_v22 = vpop.xlane.xlu1 %441 }
 0x15b   :  { %v473_v24 = vadd.f32 %v442_v22, %v345_v20  ;;  %v220_v38 = vadd.f32 %v192_v21, %v86_v32 }
 0x15d   :  { %490 = vst.msk [vmem:[#allocation2] sm:$0xff] %vm23_vm4, %v473_v24 }
 0x15e   :  { %v444_v26 = vpop.xlane.xlu0 %443  ;;  %v318_v27 = vpop.xlane.xlu1 %317 }
 0x15f   :  { %v474_v2 = vadd.f32 %v444_v26, %v346_v25  ;;  %v347_v33 = vadd.f32 %v318_v27, %v219_v31  ;;  %v91_v27 = vld [vmem:[#allocation2 + $0x40] sm:$0xff] }
 0x161   :  { %491 = vst.msk [vmem:[#allocation2 + $0x8] sm:$0xff] %vm23_vm4, %v474_v2 }
 0x162   :  { %v320_v29 = vpop.xlane.xlu0 %319  ;;  %v194_v30 = vpop.xlane.xlu1 %193 }
 0x163   :  { %v348_v41 = vadd.f32 %v320_v29, %v220_v38  ;;  %v221_v54 = vadd.f32 %v194_v30, %v87_v51  ;;  %v92_v30 = vld [vmem:[#allocation2 + $0x48] sm:$0xff] }
 0x164   :  { %v509_v36 = vld [vmem:[#allocation2] sm:$0xff] }
 0x165   :  { %v527_v42 = vadd.f32 %v1335_v37, %v509_v36 }
 0x166   :  { %v196_v34 = vpop.xlane.xlu0 %195  ;;  %v446_v35 = vpop.xlane.xlu1 %445 }
 0x167   :  { %v475_v39 = vadd.f32 %v446_v35, %v347_v33  ;;  %v222_v0 = vadd.f32 %v196_v34, %v88_v44 }
 0x168   :  { %v510_v40 = vld [vmem:[#allocation2 + $0x8] sm:$0xff] }
 0x169   :  { %492 = vst.msk [vmem:[#allocation2 + $0x10] sm:$0xff] %vm23_vm4, %v475_v39  ;;  %v528_v43 = vadd.f32 %v1335_v37, %v510_v40 }
 0x16a   :  { %v448_v45 = vpop.xlane.xlu0 %447  ;;  %v322_v48 = vpop.xlane.xlu1 %321 }
 0x16b   :  { %v476_v49 = vadd.f32 %v448_v45, %v348_v41  ;;  %v894_v50 = vpack.i.bf16 %v528_v43, %v527_v42  ;;  %v349_v56 = vadd.f32 %v322_v48, %v221_v54 }
 0x16d   :  { %493 = vst.msk [vmem:[#allocation2 + $0x18] sm:$0xff] %vm23_vm4, %v476_v49  ;;  %895 = vperm.xlu1 %893, %v894_v50   ;;  %v93_v49 = vld [vmem:[#allocation2 + $0x50] sm:$0xff] }
 0x16e   :  { %v324_v52 = vpop.xlane.xlu0 %323  ;;  %v198_v53 = vpop.xlane.xlu1 %197 }
 0x16f   :  { %v350_v3 = vadd.f32 %v324_v52, %v222_v0  ;;  %v223_v12 = vadd.f32 %v198_v53, %v89_v8  ;;  %v94_v53 = vld [vmem:[#allocation2 + $0x58] sm:$0xff] }
 0x170   :  { %v511_v60 = vld [vmem:[#allocation2 + $0x10] sm:$0xff] }
 0x171   :  { %v529_v4 = vadd.f32 %v1335_v37, %v511_v60 }
 0x172   :  { %v200_v58 = vpop.xlane.xlu0 %199  ;;  %v450_v57 = vpop.xlane.xlu1 %449 }
 0x173   :  { %v477_v1 = vadd.f32 %v450_v57, %v349_v56  ;;  %v224_v62 = vadd.f32 %v200_v58, %v90_v13 }
 0x174   :  { %v512_v46 = vld [vmem:[#allocation2 + $0x18] sm:$0xff] }
 0x175   :  { %494 = vst.msk [vmem:[#allocation2 + $0x20] sm:$0xff] %vm23_vm4, %v477_v1  ;;  %v530_v59 = vadd.f32 %v1335_v37, %v512_v46 }
 0x176   :  { %v452_v5 = vpop.xlane.xlu0 %451  ;;  %v326_v6 = vpop.xlane.xlu1 %325 }
 0x177   :  { %v478_v7 = vadd.f32 %v452_v5, %v350_v3  ;;  %v899_v47 = vpack.i.bf16 %v530_v59, %v529_v4  ;;  %v351_v14 = vadd.f32 %v326_v6, %v223_v12 }
 0x179   :  { %495 = vst.msk [vmem:[#allocation2 + $0x28] sm:$0xff] %vm23_vm4, %v478_v7  ;;  %900 = vperm.xlu0 %891, %v899_v47   ;;  %v95_v7 = vld [vmem:[#allocation2 + $0x60] sm:$0xff] }
 0x17a   :  { %v328_v9 = vpop.xlane.xlu0 %327  ;;  %v202_v11 = vpop.xlane.xlu1 %201 }
 0x17b   :  { %v352_v20 = vadd.f32 %v328_v9, %v224_v62  ;;  %v225_v29 = vadd.f32 %v202_v11, %v91_v27  ;;  %v96_v11 = vld [vmem:[#allocation2 + $0x68] sm:$0xff]  ;;  %v97_v62 = vld [vmem:[#allocation2 + $0x70] sm:$0xff]  ;;  %v98_v27 = vld [vmem:[#allocation2 + $0x78] sm:$0xff] }
 0x17c   :  { %v513_v17 = vld [vmem:[#allocation2 + $0x20] sm:$0xff] }
 0x17d   :  { %v531_v21 = vadd.f32 %v1335_v37, %v513_v17 }
 0x17e   :  { %v204_v15 = vpop.xlane.xlu0 %203  ;;  %v454_v16 = vpop.xlane.xlu1 %453 }
 0x17f   :  { %v479_v18 = vadd.f32 %v454_v16, %v351_v14  ;;  %v226_v35 = vadd.f32 %v204_v15, %v92_v30 }
 0x180   :  { %v514_v19 = vld [vmem:[#allocation2 + $0x28] sm:$0xff] }
 0x181   :  { %496 = vst.msk [vmem:[#allocation2 + $0x30] sm:$0xff] %vm23_vm4, %v479_v18  ;;  %v532_v22 = vadd.f32 %v1335_v37, %v514_v19 }
 0x182   :  { %v456_v23 = vpop.xlane.xlu0 %455  ;;  %v330_v24 = vpop.xlane.xlu1 %329 }
 0x183   :  { %v480_v25 = vadd.f32 %v456_v23, %v352_v20  ;;  %v904_v26 = vpack.i.bf16 %v532_v22, %v531_v21  ;;  %v353_v31 = vadd.f32 %v330_v24, %v225_v29 }
 0x185   :  { %497 = vst.msk [vmem:[#allocation2 + $0x38] sm:$0xff] %vm23_vm4, %v480_v25  ;;  %905 = vperm.xlu1 %893, %v904_v26  }
 0x186   :  { %v332_v2 = vpop.xlane.xlu0 %331  ;;  %v206_v28 = vpop.xlane.xlu1 %205 }
 0x187   :  { %v354_v39 = vadd.f32 %v332_v2, %v226_v35  ;;  %v227_v52 = vadd.f32 %v206_v28, %v93_v49  ;;  %v1370_v49 = vshrl.u32 %v78_v61, 7 }
 0x188   :  { %v515_v34 = vld [vmem:[#allocation2 + $0x30] sm:$0xff] }
 0x189   :  { %v533_v40 = vadd.f32 %v1335_v37, %v515_v34  ;;  %v546_v10 = vadd.s32 16, %v1370_v49  ;;  %v547_v61 = vadd.s32 24, %v1370_v49 }
 0x18a   :  { %v208_v32 = vpop.xlane.xlu0 %207  ;;  %v458_v33 = vpop.xlane.xlu1 %457 }
 0x18b   :  { %v481_v36 = vadd.f32 %v458_v33, %v353_v31  ;;  %v228_v57 = vadd.f32 %v208_v32, %v94_v53  ;;  %vm562_vm7 = vcmp.eq.s32.totalorder %v546_v10, %v1153_v63  ;;  %vm563_vm8 = vcmp.eq.s32.totalorder %v547_v61, %v1153_v63 }
 0x18c   :  { %v516_v38 = vld [vmem:[#allocation2 + $0x38] sm:$0xff]  ;;  %vm833_vm9 = vmpackc.low %vm563_vm8, %vm562_vm7 }
 0x18d   :  { %498 = vst.msk [vmem:[#allocation2 + $0x40] sm:$0xff] %vm23_vm4, %v481_v36  ;;  %v534_v41 = vadd.f32 %v1335_v37, %v516_v38 }
 0x18e   :  { %v460_v42 = vpop.xlane.xlu0 %459  ;;  %v334_v43 = vpop.xlane.xlu1 %333 }
 0x18f   :  { %v482_v45 = vadd.f32 %v460_v42, %v354_v39  ;;  %v909_v48 = vpack.i.bf16 %v534_v41, %v533_v40  ;;  %v355_v54 = vadd.f32 %v334_v43, %v227_v52 }
 0x191   :  { %499 = vst.msk [vmem:[#allocation2 + $0x48] sm:$0xff] %vm23_vm4, %v482_v45  ;;  %910 = vperm.xlu1 %893, %v909_v48  }
 0x192   :  { %v336_v50 = vpop.xlane.xlu0 %335  ;;  %v210_v51 = vpop.xlane.xlu1 %209 }
 0x193   :  { %v356_v1 = vadd.f32 %v336_v50, %v228_v57  ;;  %v229_v9 = vadd.f32 %v210_v51, %v95_v7  ;;  %v545_v50 = vadd.s32 8, %v1370_v49  ;;  %v548_v57 = vadd.s32 32, %v1370_v49 }
 0x194   :  { %v517_v58 = vld [vmem:[#allocation2 + $0x40] sm:$0xff] }
 0x195   :  { %v535_v46 = vadd.f32 %v1335_v37, %v517_v58  ;;  %vm561_vm5 = vcmp.eq.s32.totalorder %v545_v50, %v1153_v63  ;;  %vm564_vm10 = vcmp.eq.s32.totalorder %v548_v57, %v1153_v63 }
 0x196   :  { %v212_v44 = vpop.xlane.xlu0 %211  ;;  %v462_v56 = vpop.xlane.xlu1 %461 }
 0x197   :  { %v483_v60 = vadd.f32 %v462_v56, %v355_v54  ;;  %v230_v16 = vadd.f32 %v212_v44, %v96_v11 }
 0x198   :  { %v518_v0 = vld [vmem:[#allocation2 + $0x48] sm:$0xff] }
 0x199   :  { %500 = vst.msk [vmem:[#allocation2 + $0x50] sm:$0xff] %vm23_vm4, %v483_v60  ;;  %v536_v3 = vadd.f32 %v1335_v37, %v518_v0  ;;  %v549_v60 = vadd.s32 40, %v1370_v49 }
 0x19a   :  { %v464_v4 = vpop.xlane.xlu0 %463  ;;  %v338_v59 = vpop.xlane.xlu1 %337 }
 0x19b   :  { %v484_v5 = vadd.f32 %v464_v4, %v356_v1  ;;  %v914_v6 = vpack.i.bf16 %v536_v3, %v535_v46  ;;  %v357_v12 = vadd.f32 %v338_v59, %v229_v9  ;;  %vm565_vm11 = vcmp.eq.s32.totalorder %v549_v60, %v1153_v63 }
 0x19c   :  { %vm837_vm12 = vmpackc.low %vm565_vm11, %vm564_vm10  ;;  %v550_v4 = vadd.s32 48, %v1370_v49  ;;  %v551_v59 = vadd.s32 56, %v1370_v49  ;;  %v553_v9 = vadd.s32 72, %v1370_v49 }
 0x19d   :  { %501 = vst.msk [vmem:[#allocation2 + $0x58] sm:$0xff] %vm23_vm4, %v484_v5  ;;  %915 = vperm.xlu1 %893, %v914_v6  }
 0x19e   :  { %v340_v47 = vpop.xlane.xlu0 %339  ;;  %v214_v8 = vpop.xlane.xlu1 %213  ;;  %vm566_vm13 = vcmp.eq.s32.totalorder %v550_v4, %v1153_v63  ;;  %vm567_vm14 = vcmp.eq.s32.totalorder %v551_v59, %v1153_v63  ;;  %vm569_vm1 = vcmp.eq.s32.totalorder %v553_v9, %v1153_v63 }
 0x19f   :  { %v358_v19 = vadd.f32 %v340_v47, %v230_v16  ;;  %v231_v24 = vadd.f32 %v214_v8, %v97_v62  ;;  %vm841_vm15 = vmpackc.low %vm567_vm14, %vm566_vm13  ;;  %v552_v8 = vadd.s32 64, %v1370_v49  ;;  %v555_v16 = vadd.s32 88, %v1370_v49 }
 0x1a0   :  { %v519_v15 = vld [vmem:[#allocation2 + $0x50] sm:$0xff] }
 0x1a1   :  { %v537_v20 = vadd.f32 %v1335_v37, %v519_v15  ;;  %vm568_vm0 = vcmp.eq.s32.totalorder %v552_v8, %v1153_v63  ;;  %v554_v15 = vadd.s32 80, %v1370_v49 }
 0x1a2   :  { %v216_v13 = vpop.xlane.xlu0 %215  ;;  %v466_v14 = vpop.xlane.xlu1 %465  ;;  %vm845_vm2 = vmpackc.low %vm569_vm1, %vm568_vm0 }
 0x1a3   :  { %v485_v17 = vadd.f32 %v466_v14, %v357_v12  ;;  %v232_v30 = vadd.f32 %v216_v13, %v98_v27  ;;  %vm570_vm3 = vcmp.eq.s32.totalorder %v554_v15, %v1153_v63  ;;  %v559_v27 = vadd.s32 120, %v1370_v49 }
 0x1a4   :  { %v520_v18 = vld [vmem:[#allocation2 + $0x58] sm:$0xff] }
 0x1a5   :  { %502 = vst.msk [vmem:[#allocation2 + $0x60] sm:$0xff] %vm23_vm4, %v485_v17  ;;  %v538_v21 = vadd.f32 %v1335_v37, %v520_v18  ;;  %vm575_vm10 = vcmp.eq.s32.totalorder %v559_v27, %v1153_v63 }
 0x1a6   :  { %v468_v22 = vpop.xlane.xlu0 %467  ;;  %v342_v23 = vpop.xlane.xlu1 %341 }
 0x1a7   :  { %v486_v25 = vadd.f32 %v468_v22, %v358_v19  ;;  %v919_v26 = vpack.i.bf16 %v538_v21, %v537_v20  ;;  %v359_v2 = vadd.f32 %v342_v23, %v231_v24  ;;  %v556_v20 = vadd.s32 96, %v1370_v49 }
 0x1a8   :  { %v557_v21 = vadd.s32 104, %v1370_v49 }
 0x1a9   :  { %503 = vst.msk [vmem:[#allocation2 + $0x68] sm:$0xff] %vm23_vm4, %v486_v25  ;;  %920 = vperm.xlu1 %893, %v919_v26   ;;  %v558_v26 = vadd.s32 112, %v1370_v49 }
 0x1aa   :  { %v344_v28 = vpop.xlane.xlu0 %343  ;;  %v470_v29 = vpop.xlane.xlu1 %469  ;;  %vm573_vm7 = vcmp.eq.s32.totalorder %v557_v21, %v1153_v63 }
 0x1ab   :  { %v487_v31 = vadd.f32 %v470_v29, %v359_v2  ;;  %v360_v32 = vadd.f32 %v344_v28, %v232_v30 }
 0x1ac   :  { %v521_v34 = vld [vmem:[#allocation2 + $0x60] sm:$0xff] }
 0x1ad   :  { %504 = vst.msk [vmem:[#allocation2 + $0x70] sm:$0xff] %vm23_vm4, %v487_v31  ;;  %v539_v38 = vadd.f32 %v1335_v37, %v521_v34  ;;  %v964_v31 = vmov 1.0  }
 0x1ae   :  { %v472_v33 = vpop.xlane.xlu0 %471 }
 0x1af   :  { %v488_v35 = vadd.f32 %v472_v33, %v360_v32 }
 0x1b0   :  { %v522_v36 = vld [vmem:[#allocation2 + $0x68] sm:$0xff] }
 0x1b1   :  { %505 = vst.msk [vmem:[#allocation2 + $0x78] sm:$0xff] %vm23_vm4, %v488_v35  ;;  %v540_v39 = vadd.f32 %v1335_v37, %v522_v36  ;;  %vm560_vm4 = vcmp.eq.s32.totalorder %v1370_v49, %v1153_v63 }
 0x1b2   :  { %vm829_vm6 = vmpackc.low %vm561_vm5, %vm560_vm4  ;;  %vm571_vm4 = vcmp.eq.s32.totalorder %v555_v16, %v1153_v63 }
 0x1b3   :  { %v924_v40 = vpack.i.bf16 %v540_v39, %v539_v38  ;;  %vm849_vm5 = vmpackc.low %vm571_vm4, %vm570_vm3 }
 0x1b4   :  { %v523_v41 = vld [vmem:[#allocation2 + $0x70] sm:$0xff] }
 0x1b5   :  { %925 = vperm.xlu1 %893, %v924_v40   ;;  %v541_v43 = vadd.f32 %v1335_v37, %v523_v41 }
 0x1b8   :  { %v524_v42 = vld [vmem:[#allocation2 + $0x78] sm:$0xff] }
 0x1b9   :  { %v542_v45 = vadd.f32 %v1335_v37, %v524_v42 }
 0x1bb   :  { %v929_v48 = vpack.i.bf16 %v542_v45, %v541_v43 }
 0x1bd   :  { %930 = vperm.xlu1 %893, %v929_v48  }
 0x1ec   :  { %v896_v51 = vpop.permute.xlu1 %895 }
 0x1ed   :  { %v898_v52 = vunpack.i.h.bf16 %v896_v51  ;;  %v897_v53 = vunpack.i.l.bf16 %v896_v51 }
 0x1ef   :  { %v828_v37 = vpack.c.bf16 %v898_v52, %v897_v53 }
 0x1f1   :  { %830 = vmatpush3.bf16.msk.msra.mxu0 %vm829_vm6, %v828_v37  ;;  %vm572_vm6 = vcmp.eq.s32.totalorder %v556_v20, %v1153_v63 }
 0x1f2   :  { %831 = vmatprep.subr.bf16.mxu0 %v962_v55  ;;  %vm853_vm8 = vmpackc.low %vm573_vm7, %vm572_vm6 }
 0x1f8   :  { %v901_v54 = vpop.permute.xlu0 %900 }
 0x1f9   :  { %v903_v44 = vunpack.i.h.bf16 %v901_v54  ;;  %v902_v56 = vunpack.i.l.bf16 %v901_v54 }
 0x1fb   :  { %v832_v58 = vpack.c.bf16 %v903_v44, %v902_v56 }
 0x1fd   :  { %834 = vmatpush3.bf16.msk.msra.mxu0 %vm833_vm9, %v832_v58  ;;  %vm574_vm9 = vcmp.eq.s32.totalorder %v558_v26, %v1153_v63 }
 0x1fe   :  { %835 = vmatprep.subr.bf16.mxu0 %v962_v55  ;;  %vm857_vm11 = vmpackc.low %vm575_vm10, %vm574_vm9 }
 0x204   :  { %v906_v0 = vpop.permute.xlu1 %905 }
 0x205   :  { %v908_v1 = vunpack.i.h.bf16 %v906_v0  ;;  %v907_v46 = vunpack.i.l.bf16 %v906_v0 }
 0x207   :  { %v836_v3 = vpack.c.bf16 %v908_v1, %v907_v46 }
 0x209   :  { %838 = vmatpush3.bf16.msk.msra.mxu0 %vm837_vm12, %v836_v3 }
 0x20a   :  { %839 = vmatprep.subr.bf16.mxu0 %v962_v55 }
 0x210   :  { %v911_v5 = vpop.permute.xlu1 %910 }
 0x211   :  { %v913_v6 = vunpack.i.h.bf16 %v911_v5  ;;  %v912_v7 = vunpack.i.l.bf16 %v911_v5 }
 0x213   :  { %v840_v47 = vpack.c.bf16 %v913_v6, %v912_v7 }
 0x215   :  { %842 = vmatpush3.bf16.msk.msra.mxu0 %vm841_vm15, %v840_v47 }
 0x216   :  { %843 = vmatprep.subr.bf16.mxu0 %v962_v55 }
 0x21c   :  { %v916_v11 = vpop.permute.xlu1 %915 }
 0x21d   :  { %v918_v12 = vunpack.i.h.bf16 %v916_v11  ;;  %v917_v13 = vunpack.i.l.bf16 %v916_v11 }
 0x21f   :  { %v844_v14 = vpack.c.bf16 %v918_v12, %v917_v13 }
 0x221   :  { %846 = vmatpush3.bf16.msk.msra.mxu0 %vm845_vm2, %v844_v14 }
 0x222   :  { %847 = vmatprep.subr.bf16.mxu0 %v962_v55 }
 0x228   :  { %v921_v17 = vpop.permute.xlu1 %920 }
 0x229   :  { %v923_v62 = vunpack.i.h.bf16 %v921_v17  ;;  %v922_v18 = vunpack.i.l.bf16 %v921_v17 }
 0x22b   :  { %v848_v19 = vpack.c.bf16 %v923_v62, %v922_v18 }
 0x22d   :  { %850 = vmatpush3.bf16.msk.msra.mxu0 %vm849_vm5, %v848_v19 }
 0x22e   :  { %851 = vmatprep.subr.bf16.mxu0 %v962_v55 }
 0x234   :  { %v926_v22 = vpop.permute.xlu1 %925 }
 0x235   :  { %v928_v23 = vunpack.i.h.bf16 %v926_v22  ;;  %v927_v24 = vunpack.i.l.bf16 %v926_v22 }
 0x237   :  { %v852_v25 = vpack.c.bf16 %v928_v23, %v927_v24 }
 0x239   :  { %854 = vmatpush3.bf16.msk.msra.mxu0 %vm853_vm8, %v852_v25 }
 0x23a   :  { %855 = vmatprep.subr.bf16.mxu0 %v962_v55 }
 0x23c   :  { %v931_v2 = vpop.permute.xlu1 %930 }
 0x23d   :  { %v933_v28 = vunpack.i.h.bf16 %v931_v2  ;;  %v932_v29 = vunpack.i.l.bf16 %v931_v2 }
 0x23f   :  { %v856_v30 = vpack.c.bf16 %v933_v28, %v932_v29 }
 0x241   :  { %858 = vmatpush3.bf16.msk.msra.mxu0 %vm857_vm11, %v856_v30 }
 0x244   :  { %825 = vmatmul.mubr.f32.vlgmr.msra.gmra.mrb[0].mxu0 %v964_v31 }
 0x317   :  { %v738_v32 = vpop.f32.mrb[0].mxu0 }
 0x318   :  { %742 = vst [vmem:[#allocation4] sm:$0x1] %v738_v32  ;;  %v826_v33 = vpop.f32.mrb[1].mxu0 }
 0x319   :  { %945 = shalt.err (!%p942_p4)
}
 0x31a   :  { %s946_s28 = scalar_lea.hbm %s1427_s4, 16 }
 0x31b   :  { %p947_p5 = scmp.ne.s32.totalorder %s1427_s4, %s946_s28  ;;  %p950_p6 = scmp.lt.u32.totalorder %s946_s28, %s1427_s4 }
 0x31d   :  { %p952_p7 = pnand %p950_p6, %p947_p5 }
 0x31f   :  { %955 = shalt.err (!%p952_p7)
}
 0x320   :  { %752 = dma.vmem_to_hbm [thread:$0]  %s750_s23, 16, %s1427_s4, [#allocation5]  }
 0x321   :  { %956 = dma.done.wait [#allocation5], 16  }
 0x322   :  { %957 = vsyncadd [#allocation5], 4294967280 }
 0x323   :  { %756 = vsyncpa [#allocation5], 1 }

</bundles_post_ra>
